<compile_context>
chip_gen: v7x
topology: tpu7x:2x2x1
jax: 0.10.0
libtpu: 0.0.40
codegen_flags: <defaults>
</compile_context>

<pallas_src>
import functools

import jax
import jax.numpy as jnp
import numpy as np
from jax.experimental import pallas as pl
from jax.experimental.pallas import tpu as pltpu


def _fused_prompt_kernel(
    n_ctx, n_ctx_ab, n_pro, n_pro_ab, n_ab_handle,
    # inputs (all fully resident in VMEM)
    normal_prefix_ref, normal_ctx_ref, normal_suffix_ref,
    ab_prefix_h_ref, ab_suffix_h_ref,
    ab_prefix_l_ref, abnormal_ctx_ref, ab_suffix_l_ref,
    # outputs
    out_normal_ref, out_handle_ref, out_learned_ref,
):
    """Assemble all three prompt tensors in one invocation.

    Semantics (matching the PyTorch forward):
      normal_prompts           = cat([prefix, normal_ctx, suffix], dim=1)
      abnormal_prompts_handle  = cat([prefix_h,
                                      expand(normal_ctx over n_ab_handle),
                                      suffix_h], dim=1)
      abnormal_prompts_learned = cat([prefix_l,
                                      expand(normal_ctx over n_pro_ab),
                                      expand(abnormal_ctx over n_pro),
                                      suffix_l], dim=1)
    """
    # Load the two learnable ctx blocks exactly once; all replication below
    # happens in registers, never by re-reading VMEM.
    normal_ctx = normal_ctx_ref[...]        # (n_pro,    n_ctx,    dim)
    abnormal_ctx = abnormal_ctx_ref[...]    # (n_pro_ab, n_ctx_ab, dim)
    dim = normal_ctx.shape[-1]

    # ---- (1) normal prompts: one aligned full-tile store --------------------
    out_normal_ref[...] = jnp.concatenate(
        [normal_prefix_ref[...], normal_ctx, normal_suffix_ref[...]], axis=1)

    # ---- (2) abnormal prompts (handcrafted states) ---------------------------
    # normal_ctx.expand(n_ab_handle, n_pro, ...).reshape(-1, n_ctx, dim):
    # the full (n_pro, n_ctx, dim) ctx block repeats n_ab_handle times
    # (prompt index varies fastest).
    ctx_handle = jnp.broadcast_to(
        normal_ctx[None], (n_ab_handle, n_pro, n_ctx, dim)
    ).reshape(n_ab_handle * n_pro, n_ctx, dim)
    out_handle_ref[...] = jnp.concatenate(
        [ab_prefix_h_ref[...], ctx_handle, ab_suffix_h_ref[...]], axis=1)

    # ---- (3) abnormal prompts (learned states) --------------------------------
    # normal_ctx.expand(n_pro_ab, n_pro, ...): ctx block repeats n_pro_ab times
    # (prompt index varies fastest).
    ctx_learned = jnp.broadcast_to(
        normal_ctx[None], (n_pro_ab, n_pro, n_ctx, dim)
    ).reshape(n_pro_ab * n_pro, n_ctx, dim)
    # abnormal_ctx.expand(n_pro, n_pro_ab, ...): abnormal block repeats n_pro
    # times (abnormal index varies fastest) -- note the swapped leading order.
    ab_ctx_learned = jnp.broadcast_to(
        abnormal_ctx[None], (n_pro, n_pro_ab, n_ctx_ab, dim)
    ).reshape(n_pro * n_pro_ab, n_ctx_ab, dim)
    out_learned_ref[...] = jnp.concatenate(
        [ab_prefix_l_ref[...], ctx_learned, ab_ctx_learned,
         ab_suffix_l_ref[...]], axis=1)


def prompt_learner_forward(normal_prefix, normal_ctx, normal_suffix,
                           ab_prefix_h, ab_suffix_h,
                           ab_prefix_l, abnormal_ctx, ab_suffix_l):
    """Single fused pallas_call producing all three prompt tensors."""
    n_pro, n_ctx, dim = normal_ctx.shape
    n_pro_ab, n_ctx_ab, _ = abnormal_ctx.shape
    n_handle_rows = ab_prefix_h.shape[0]
    assert n_handle_rows % n_pro == 0, (
        "handle prompt rows must be a multiple of n_pro")
    n_ab_handle = n_handle_rows // n_pro
    n_learned_rows = ab_prefix_l.shape[0]
    assert n_learned_rows == n_pro * n_pro_ab, (
        "learned prompt rows must equal n_pro * n_pro_ab")
    seq_len = 1 + n_ctx + normal_suffix.shape[1]
    dtype = normal_ctx.dtype

    kernel = functools.partial(
        _fused_prompt_kernel, n_ctx, n_ctx_ab, n_pro, n_pro_ab, n_ab_handle)

    # Whole-array VMEM blocks, no grid: working set is <1 MiB, so a single
    # invocation with everything resident is both the simplest and the fastest
    # structure (no per-step pipeline overhead, no repeated ctx DMA).
    vmem_spec = pl.BlockSpec(memory_space=pltpu.MemorySpace.VMEM)

    out_shapes = (
        jax.ShapeDtypeStruct((n_pro, seq_len, dim), dtype),
        jax.ShapeDtypeStruct((n_handle_rows, seq_len, dim), dtype),
        jax.ShapeDtypeStruct((n_learned_rows, seq_len, dim), dtype),
    )

    inputs = (normal_prefix, normal_ctx, normal_suffix,
              ab_prefix_h, ab_suffix_h,
              ab_prefix_l, abnormal_ctx, ab_suffix_l)
    itemsize = jnp.dtype(dtype).itemsize
    bytes_accessed = (
        sum(int(np.prod(x.shape)) for x in inputs) * itemsize
        + sum(int(np.prod(s.shape)) for s in out_shapes) * itemsize)

    return pl.pallas_call(
        kernel,
        out_shape=out_shapes,
        in_specs=[vmem_spec] * 8,
        out_specs=(vmem_spec, vmem_spec, vmem_spec),
        cost_estimate=pl.CostEstimate(
            flops=0, transcendentals=0, bytes_accessed=bytes_accessed),
    )(*inputs)


class PromptLearnerPallas:
    """JAX/Pallas re-implementation of PromptLearner's forward()."""

    def __init__(self, n_ctx, n_pro, n_ctx_ab, n_pro_ab, n_ab_handle,
                 ctx_dim, seq_len, key, dtype=jnp.float32):
        self.n_ctx = n_ctx
        self.n_pro = n_pro
        self.n_ctx_ab = n_ctx_ab
        self.n_pro_ab = n_pro_ab
        self.n_ab_handle = n_ab_handle

        keys = jax.random.split(key, 8)

        # Learnable ctx vectors: nn.init.normal_(std=0.02)
        self.normal_ctx = (0.02 * jax.random.normal(
            keys[0], (n_pro, n_ctx, ctx_dim))).astype(dtype)
        self.abnormal_ctx = (0.02 * jax.random.normal(
            keys[1], (n_pro_ab, n_ctx_ab, ctx_dim))).astype(dtype)

        # Frozen "token embedding" buffers.  In the original module these come
        # from clip_model.token_embedding(tokenized prompts); here they are
        # deterministic synthetic embeddings with the same shapes.
        # TODO(synk): real CLIP tokenization/embedding is not reproduced; the
        # forward only needs the prefix/suffix slices, which we synthesize.
        n_suf = seq_len - 1 - n_ctx
        n_suf_learned = seq_len - 1 - n_ctx - n_ctx_ab

        self.normal_token_prefix = jax.random.normal(
            keys[2], (n_pro, 1, ctx_dim)).astype(dtype)
        self.normal_token_suffix = jax.random.normal(
            keys[3], (n_pro, n_suf, ctx_dim)).astype(dtype)

        n_handle_rows = n_ab_handle * n_pro
        self.abnormal_token_prefix_handle = jax.random.normal(
            keys[4], (n_handle_rows, 1, ctx_dim)).astype(dtype)
        self.abnormal_token_suffix_handle = jax.random.normal(
            keys[5], (n_handle_rows, n_suf, ctx_dim)).astype(dtype)

        n_learned_rows = n_pro_ab * n_pro
        self.abnormal_token_prefix_learned = jax.random.normal(
            keys[6], (n_learned_rows, 1, ctx_dim)).astype(dtype)
        self.abnormal_token_suffix_learned = jax.random.normal(
            keys[7], (n_learned_rows, n_suf_learned, ctx_dim)).astype(dtype)

    def forward(self):
        return prompt_learner_forward(
            self.normal_token_prefix, self.normal_ctx, self.normal_token_suffix,
            self.abnormal_token_prefix_handle, self.abnormal_token_suffix_handle,
            self.abnormal_token_prefix_learned, self.abnormal_ctx,
            self.abnormal_token_suffix_learned)

    # Pure-JAX reference for verification (mirrors the PyTorch forward).
    def forward_ref(self):
        n_pro, n_ctx, dim = self.normal_ctx.shape
        n_pro_ab, n_ctx_ab, _ = self.abnormal_ctx.shape

        normal_prompts = jnp.concatenate(
            [self.normal_token_prefix, self.normal_ctx,
             self.normal_token_suffix], axis=1)

        normal_ctx1 = jnp.broadcast_to(
            self.normal_ctx[None], (self.n_ab_handle, n_pro, n_ctx, dim)
        ).reshape(-1, n_ctx, dim)
        abnormal_prompts_handle = jnp.concatenate(
            [self.abnormal_token_prefix_handle, normal_ctx1,
             self.abnormal_token_suffix_handle], axis=1)

        normal_ctx2 = jnp.broadcast_to(
            self.normal_ctx[None], (n_pro_ab, n_pro, n_ctx, dim)
        ).reshape(-1, n_ctx, dim)
        abnormal_ctx_e = jnp.broadcast_to(
            self.abnormal_ctx[None], (n_pro, n_pro_ab, n_ctx_ab, dim)
        ).reshape(-1, n_ctx_ab, dim)
        abnormal_prompts_learned = jnp.concatenate(
            [self.abnormal_token_prefix_learned, normal_ctx2,
             abnormal_ctx_e, self.abnormal_token_suffix_learned], axis=1)

        return normal_prompts, abnormal_prompts_handle, abnormal_prompts_learned


if __name__ == "__main__":
    key = jax.random.PRNGKey(0)

    # Small, forward-consistent shapes.
    n_ctx = 4        # normal context tokens
    n_pro = 2        # normal prompt variants
    n_ctx_ab = 2     # abnormal context tokens
    n_pro_ab = 3     # abnormal prompt variants
    n_ab_handle = 5  # number of handcrafted anomaly states
    ctx_dim = 128    # token embedding dim (lane-aligned)
    seq_len = 16     # total token length per prompt

    learner = PromptLearnerPallas(
        n_ctx, n_pro, n_ctx_ab, n_pro_ab, n_ab_handle,
        ctx_dim, seq_len, key, dtype=jnp.float32)

    outs = learner.forward()
    outs = jax.block_until_ready(outs)

    refs = learner.forward_ref()
    names = ("normal_prompts", "abnormal_prompts_handle",
             "abnormal_prompts_learned")
    for name, o, r in zip(names, outs, refs):
        assert o.shape == r.shape, (name, o.shape, r.shape)
        np.testing.assert_allclose(np.asarray(o), np.asarray(r),
                                   rtol=0, atol=0)

    print("KERNEL_OK")
</pallas_src>

<mosaic_0001>
module attributes {stable_mosaic.version = 11 : i64} {
  func.func @_fused_prompt_kernel(%arg0: memref<2x1x128xf32, #tpu.memory_space<vmem>>, %arg1: memref<2x4x128xf32, #tpu.memory_space<vmem>>, %arg2: memref<2x11x128xf32, #tpu.memory_space<vmem>>, %arg3: memref<10x1x128xf32, #tpu.memory_space<vmem>>, %arg4: memref<10x11x128xf32, #tpu.memory_space<vmem>>, %arg5: memref<6x1x128xf32, #tpu.memory_space<vmem>>, %arg6: memref<3x2x128xf32, #tpu.memory_space<vmem>>, %arg7: memref<6x9x128xf32, #tpu.memory_space<vmem>>, %arg8: memref<2x16x128xf32, #tpu.memory_space<vmem>>, %arg9: memref<10x16x128xf32, #tpu.memory_space<vmem>>, %arg10: memref<6x16x128xf32, #tpu.memory_space<vmem>>) attributes {dimension_semantics = [], scalar_prefetch = 0 : i64, scratch_operands = 0 : i64, tpu.core_type = #tpu.core_type<tc>} {
    %c0 = arith.constant 0 : index
    %c0_0 = arith.constant 0 : index
    %c0_1 = arith.constant 0 : index
    %0 = vector.load %arg1[%c0, %c0_0, %c0_1] : memref<2x4x128xf32, #tpu.memory_space<vmem>>, vector<2x4x128xf32>
    %c0_2 = arith.constant 0 : index
    %c0_3 = arith.constant 0 : index
    %c0_4 = arith.constant 0 : index
    %1 = vector.load %arg6[%c0_2, %c0_3, %c0_4] : memref<3x2x128xf32, #tpu.memory_space<vmem>>, vector<3x2x128xf32>
    %c0_5 = arith.constant 0 : index
    %c0_6 = arith.constant 0 : index
    %c0_7 = arith.constant 0 : index
    %2 = vector.load %arg0[%c0_5, %c0_6, %c0_7] : memref<2x1x128xf32, #tpu.memory_space<vmem>>, vector<2x1x128xf32>
    %c0_8 = arith.constant 0 : index
    %c0_9 = arith.constant 0 : index
    %c0_10 = arith.constant 0 : index
    %3 = vector.load %arg2[%c0_8, %c0_9, %c0_10] : memref<2x11x128xf32, #tpu.memory_space<vmem>>, vector<2x11x128xf32>
    %4 = tpu.concatenate %2, %0, %3 in 1 : vector<2x1x128xf32>, vector<2x4x128xf32>, vector<2x11x128xf32> -> vector<2x16x128xf32>
    %c0_11 = arith.constant 0 : index
    %c0_12 = arith.constant 0 : index
    %c0_13 = arith.constant 0 : index
    %5 = vector.load %arg8[%c0_11, %c0_12, %c0_13] : memref<2x16x128xf32, #tpu.memory_space<vmem>>, vector<2x16x128xf32>
    tpu.vector_store %arg8[%c0_11, %c0_12, %c0_13], %4 {strides = array<i32>} : memref<2x16x128xf32, #tpu.memory_space<vmem>>, vector<2x16x128xf32>,
    %6 = vector.shape_cast %0 : vector<2x4x128xf32> to vector<1x2x4x128xf32>
    %7 = vector.shape_cast %6 : vector<1x2x4x128xf32> to vector<1x2x4x128xf32>
    %8 = vector.broadcast %7 : vector<1x2x4x128xf32> to vector<5x2x4x128xf32>
    %9 = vector.shape_cast %8 : vector<5x2x4x128xf32> to vector<10x4x128xf32>
    %c0_14 = arith.constant 0 : index
    %c0_15 = arith.constant 0 : index
    %c0_16 = arith.constant 0 : index
    %10 = vector.load %arg3[%c0_14, %c0_15, %c0_16] : memref<10x1x128xf32, #tpu.memory_space<vmem>>, vector<10x1x128xf32>
    %c0_17 = arith.constant 0 : index
    %c0_18 = arith.constant 0 : index
    %c0_19 = arith.constant 0 : index
    %11 = vector.load %arg4[%c0_17, %c0_18, %c0_19] : memref<10x11x128xf32, #tpu.memory_space<vmem>>, vector<10x11x128xf32>
    %12 = tpu.concatenate %10, %9, %11 in 1 : vector<10x1x128xf32>, vector<10x4x128xf32>, vector<10x11x128xf32> -> vector<10x16x128xf32>
    %c0_20 = arith.constant 0 : index
    %c0_21 = arith.constant 0 : index
    %c0_22 = arith.constant 0 : index
    %13 = vector.load %arg9[%c0_20, %c0_21, %c0_22] : memref<10x16x128xf32, #tpu.memory_space<vmem>>, vector<10x16x128xf32>
    tpu.vector_store %arg9[%c0_20, %c0_21, %c0_22], %12 {strides = array<i32>} : memref<10x16x128xf32, #tpu.memory_space<vmem>>, vector<10x16x128xf32>,
    %14 = vector.shape_cast %0 : vector<2x4x128xf32> to vector<1x2x4x128xf32>
    %15 = vector.shape_cast %14 : vector<1x2x4x128xf32> to vector<1x2x4x128xf32>
    %16 = vector.broadcast %15 : vector<1x2x4x128xf32> to vector<3x2x4x128xf32>
    %17 = vector.shape_cast %16 : vector<3x2x4x128xf32> to vector<6x4x128xf32>
    %18 = vector.shape_cast %1 : vector<3x2x128xf32> to vector<1x3x2x128xf32>
    %19 = vector.shape_cast %18 : vector<1x3x2x128xf32> to vector<1x3x2x128xf32>
    %20 = vector.broadcast %19 : vector<1x3x2x128xf32> to vector<2x3x2x128xf32>
    %21 = vector.shape_cast %20 : vector<2x3x2x128xf32> to vector<6x2x128xf32>
    %c0_23 = arith.constant 0 : index
    %c0_24 = arith.constant 0 : index
    %c0_25 = arith.constant 0 : index
    %22 = vector.load %arg5[%c0_23, %c0_24, %c0_25] : memref<6x1x128xf32, #tpu.memory_space<vmem>>, vector<6x1x128xf32>
    %c0_26 = arith.constant 0 : index
    %c0_27 = arith.constant 0 : index
    %c0_28 = arith.constant 0 : index
    %23 = vector.load %arg7[%c0_26, %c0_27, %c0_28] : memref<6x9x128xf32, #tpu.memory_space<vmem>>, vector<6x9x128xf32>
    %24 = tpu.concatenate %22, %17, %21, %23 in 1 : vector<6x1x128xf32>, vector<6x4x128xf32>, vector<6x2x128xf32>, vector<6x9x128xf32> -> vector<6x16x128xf32>
    %c0_29 = arith.constant 0 : index
    %c0_30 = arith.constant 0 : index
    %c0_31 = arith.constant 0 : index
    %25 = vector.load %arg10[%c0_29, %c0_30, %c0_31] : memref<6x16x128xf32, #tpu.memory_space<vmem>>, vector<6x16x128xf32>
    tpu.vector_store %arg10[%c0_29, %c0_30, %c0_31], %24 {strides = array<i32>} : memref<6x16x128xf32, #tpu.memory_space<vmem>>, vector<6x16x128xf32>,
    return
  }
}

</mosaic_0001>

<bundles_post_ra>
// kernel: tpu_custom_call.1
= control target key start
LH: loop header
LB: loop body
LE: loop exit
PB: predicated region body
PF: predicated region fallthrough
CT: control target
= control target key end

     0   :  { %16 = vsyncpa [#allocation3], 0  ;;  %s996_s0 = inlined_call_operand.hbm [shape: f32[2,1,128], index: 0, kind: input, shape index: {}]   ;;  %s997_s1 = inlined_call_operand.hbm [shape: f32[2,4,128], index: 1, kind: input, shape index: {}]   ;;  %s998_s2 = inlined_call_operand.vmem [shape: f32[2,11,128], index: 2, kind: input, shape index: {}]   ;;  %s999_s3 = inlined_call_operand.vmem [shape: f32[10,1,128], index: 3, kind: input, shape index: {}]   ;;  %s1000_s4 = inlined_call_operand.vmem [shape: f32[10,11,128], index: 4, kind: input, shape index: {}]   ;;  %s1001_s5 = inlined_call_operand.vmem [shape: f32[6,1,128], index: 5, kind: input, shape index: {}]   ;;  %s1002_s6 = inlined_call_operand.hbm [shape: f32[3,2,128], index: 6, kind: input, shape index: {}]   ;;  %s1003_s7 = inlined_call_operand.vmem [shape: f32[6,9,128], index: 7, kind: input, shape index: {}]   ;;  %s1004_s8 = inlined_call_operand.hbm [shape: f32[2,16,128], index: 8, kind: output, shape index: {0}]   ;;  %s1005_s9 = inlined_call_operand.hbm [shape: f32[10,16,128], index: 9, kind: output, shape index: {1}]   ;;  %s1006_s10 = inlined_call_operand.hbm [shape: f32[6,16,128], index: 10, kind: output, shape index: {2}]  }
   0x1   :  { %17 = vsyncpa [#allocation6], 0 }
   0x2   :  { %18 = vsyncpa [#allocation4], 0 }
   0x3   :  { %19 = vsyncpa [#allocation10], 0  ;;  %s559_s13 = smov [#allocation5]   ;;  %s419_s17 = scalar_lea.hbm %s997_s1, 128 }
   0x4   :  { %s37_s14 = sshll.u32 %s559_s13, 4  ;;  %p420_p0 = scmp.ne.s32.totalorder %s997_s1, %s419_s17  ;;  %s38_s14 = int_to_ptr.vmem [resolvable:$true] %s37_s14 }
   0x5   :  { %p423_p1 = scmp.lt.u32.totalorder %s419_s17, %s997_s1 }
   0x7   :  { %p425_p2 = pnand %p423_p1, %p420_p0 }
   0x9   :  { %428 = shalt.err (!%p425_p2)
}
   0xa   :  { %s429_s22 = scalar_lea.vmem %s38_s14, 128  ;;  %p434_p4 = scmp.lt.s32.totalorder %s38_s14, %s38_s14 }
   0xb   :  { %p430_p3 = scmp.ne.s32.totalorder %s38_s14, %s429_s22  ;;  %p435_p5 = scmp.lt.s32.totalorder %s429_s22, %s429_s22 }
   0xd   :  { %p436_p6 = por %p435_p5, %p434_p4 }
   0xf   :  { %p437_p7 = pnand %p436_p6, %p430_p3 }
  0x11   :  { %440 = shalt.err (!%p437_p7)
}
  0x12   :  { %s560_s23 = smov 64   ;;  %s561_s24 = smov 4  }
  0x13   :  { %43 = dma.hbm_to_vmem [thread:$0]  %s997_s1, 128, %s38_s14, [#allocation6], %s560_s23, %s560_s23, %s561_s24  }
  0x14   :  { %s562_s27 = smov [#allocation2]   ;;  %s441_s11 = scalar_lea.hbm %s996_s0, 32 }
  0x15   :  { %s25_s28 = sshll.u32 %s562_s27, 4  ;;  %p442_p8 = scmp.ne.s32.totalorder %s996_s0, %s441_s11  ;;  %s26_s28 = int_to_ptr.vmem [resolvable:$true] %s25_s28 }
  0x16   :  { %p445_p9 = scmp.lt.u32.totalorder %s441_s11, %s996_s0 }
  0x18   :  { %p447_p10 = pnand %p445_p9, %p442_p8 }
  0x1a   :  { %450 = shalt.err (!%p447_p10)
}
  0x1b   :  { %s451_s17 = scalar_lea.vmem %s26_s28, 32  ;;  %p456_p12 = scmp.lt.s32.totalorder %s26_s28, %s26_s28 }
  0x1c   :  { %p452_p11 = scmp.ne.s32.totalorder %s26_s28, %s451_s17  ;;  %p457_p13 = scmp.lt.s32.totalorder %s451_s17, %s451_s17 }
  0x1e   :  { %p458_p0 = por %p457_p13, %p456_p12 }
  0x20   :  { %p459_p1 = pnand %p458_p0, %p452_p11 }
  0x22   :  { %462 = shalt.err (!%p459_p1)
}
  0x23   :  { %s563_s1 = smov 16   ;;  %s564_s14 = smov 1  }
  0x24   :  { %31 = dma.hbm_to_vmem [thread:$0]  %s996_s0, 32, %s26_s28, [#allocation3], %s563_s1, %s563_s1, %s564_s14  }
  0x25   :  { %s565_s20 = smov [#allocation7]   ;;  %s463_s24 = scalar_lea.hbm %s1002_s6, 96 }
  0x26   :  { %s57_s21 = sshll.u32 %s565_s20, 4  ;;  %p464_p2 = scmp.ne.s32.totalorder %s1002_s6, %s463_s24  ;;  %s58_s21 = int_to_ptr.vmem [resolvable:$true] %s57_s21 }
  0x27   :  { %p467_p3 = scmp.lt.u32.totalorder %s463_s24, %s1002_s6 }
  0x29   :  { %p469_p4 = pnand %p467_p3, %p464_p2 }
  0x2b   :  { %472 = shalt.err (!%p469_p4)
}
  0x2c   :  { %s473_s30 = scalar_lea.vmem %s58_s21, 96  ;;  %p478_p6 = scmp.lt.s32.totalorder %s58_s21, %s58_s21 }
  0x2d   :  { %p474_p5 = scmp.ne.s32.totalorder %s58_s21, %s473_s30  ;;  %p479_p7 = scmp.lt.s32.totalorder %s473_s30, %s473_s30 }
  0x2f   :  { %p480_p8 = por %p479_p7, %p478_p6 }
  0x31   :  { %p481_p9 = pnand %p480_p8, %p474_p5 }
  0x33   :  { %484 = shalt.err (!%p481_p9)
}
  0x34   :  { %s566_s0 = smov 32   ;;  %s567_s28 = smov 2  }
  0x35   :  { %63 = dma.hbm_to_vmem [thread:$0]  %s1002_s6, 96, %s58_s21, [#allocation6], %s566_s0, %s566_s0, %s567_s28  }
  0x36   :  { %551 = dma.done.wait [#allocation3], 32  }
  0x37   :  { %552 = vsyncadd [#allocation3], 4294967264 }
  0x38   :  { %553 = dma.done.wait [#allocation6], 224  }
  0x39   :  { %554 = vsyncadd [#allocation6], 4294967072  ;;  %vm96_vm0 = vcmask 1044480   ;;  %vm107_vm1 = vcmask 1040384   ;;  %s568_s13 = smov [#allocation9]   ;;  %s569_s16 = smov [#allocation8]  }
  0x3a   :  { %s664_s15 = sshll.u32 %s568_s13, 4  ;;  %s666_s17 = sshll.u32 %s569_s16, 4  ;;  %v75_v0 = vld [vmem:[#allocation5] sm:$0xf]  ;;  %v116_v1 = vld [vmem:[%s999_s3] sm:$0x1]  ;;  %s887_s15 = int_to_ptr.vmem [resolvable:$true] %s664_s15  ;;  %s904_s17 = int_to_ptr.vmem [resolvable:$true] %s666_s17 }
  0x3b   :  { %v126_v2 = vld [vmem:[%s1000_s4] sm:$0xff]  ;;  %v674_v3 = vrot.slane %v75_v0, 7  ;;  %v127_v5 = vld [vmem:[%s1000_s4 + $0x8] sm:$0x7]  ;;  %v128_v10 = vld [vmem:[%s1000_s4 + $0x10] sm:$0xff]  ;;  %vm295_vm2 = vcmask 1046528   ;;  %p490_p11 = scmp.lt.s32.totalorder %s887_s15, %s887_s15 }
  0x3c   :  { %v166_v4 = vrot.slane %v126_v2, 3  ;;  %v76_v6 = vld [vmem:[#allocation5 + $0x4] sm:$0xf]  ;;  %v167_v7 = vrot.slane %v127_v5, 3  ;;  %v117_v9 = vld [vmem:[%s999_s3 + $0x1] sm:$0x1] }
  0x3d   :  { %v679_v8 = vrot.slane %v76_v6, 7  ;;  %v130_v11 = vld [vmem:[%s1000_s4 + $0x20] sm:$0xff]  ;;  %v216_v12 = vsel %vm107_vm1, %v116_v1, %v674_v3  ;;  %v169_v13 = vrot.slane %v128_v10, 3  ;;  %v129_v14 = vld [vmem:[%s1000_s4 + $0x18] sm:$0x7]  ;;  %v132_v23 = vld [vmem:[%s1000_s4 + $0x30] sm:$0xff] }
  0x3e   :  { %v118_v15 = vld [vmem:[%s999_s3 + $0x2] sm:$0x1]  ;;  %v172_v16 = vrot.slane %v130_v11, 3  ;;  %v226_v17 = vsel %vm96_vm0, %v216_v12, %v166_v4  ;;  %v168_v18 = vsel %vm96_vm0, %v166_v4, %v167_v7  ;;  %v170_v20 = vrot.slane %v129_v14, 3  ;;  %v131_v21 = vld [vmem:[%s1000_s4 + $0x28] sm:$0x7] }
  0x3f   :  { %v217_v19 = vsel %vm107_vm1, %v117_v9, %v679_v8  ;;  %v119_v22 = vld [vmem:[%s999_s3 + $0x3] sm:$0x1]  ;;  %236 = vst [vmem:[#allocation9] sm:$0xff] %v226_v17  ;;  %237 = vst [vmem:[#allocation9 + $0x8] sm:$0xff] %v168_v18  ;;  %v218_v25 = vsel %vm107_vm1, %v118_v15, %v674_v3  ;;  %v173_v26 = vrot.slane %v131_v21, 3  ;;  %v175_v27 = vrot.slane %v132_v23, 3 }
  0x40   :  { %v227_v24 = vsel %vm96_vm0, %v217_v19, %v169_v13  ;;  %v133_v28 = vld [vmem:[%s1000_s4 + $0x38] sm:$0x7]  ;;  %v120_v29 = vld [vmem:[%s999_s3 + $0x4] sm:$0x1]  ;;  %v171_v30 = vsel %vm96_vm0, %v169_v13, %v170_v20  ;;  %v228_v31 = vsel %vm96_vm0, %v218_v25, %v172_v16  ;;  %v219_v32 = vsel %vm107_vm1, %v119_v22, %v679_v8  ;;  %v135_v35 = vld [vmem:[%s1000_s4 + $0x48] sm:$0x7] }
  0x41   :  { %238 = vst [vmem:[#allocation9 + $0x10] sm:$0xff] %v227_v24  ;;  %v176_v33 = vrot.slane %v133_v28, 3  ;;  %v134_v34 = vld [vmem:[%s1000_s4 + $0x40] sm:$0xff]  ;;  %239 = vst [vmem:[#allocation9 + $0x18] sm:$0xff] %v171_v30  ;;  %v174_v37 = vsel %vm96_vm0, %v172_v16, %v173_v26  ;;  %v229_v38 = vsel %vm96_vm0, %v219_v32, %v175_v27  ;;  %v220_v40 = vsel %vm107_vm1, %v120_v29, %v674_v3  ;;  %v136_v41 = vld [vmem:[%s1000_s4 + $0x50] sm:$0xff]  ;;  %s570_s29 = smov [#allocation11]  }
  0x42   :  { %v121_v36 = vld [vmem:[%s999_s3 + $0x5] sm:$0x1]  ;;  %240 = vst [vmem:[#allocation9 + $0x20] sm:$0xff] %v228_v31  ;;  %v178_v39 = vrot.slane %v134_v34, 3  ;;  %v137_v42 = vld [vmem:[%s1000_s4 + $0x58] sm:$0x7] }
  0x43   :  { %v122_v43 = vld [vmem:[%s999_s3 + $0x6] sm:$0x1]  ;;  %241 = vst [vmem:[#allocation9 + $0x28] sm:$0xff] %v174_v37  ;;  %242 = vst [vmem:[#allocation9 + $0x30] sm:$0xff] %v229_v38  ;;  %v177_v44 = vsel %vm96_vm0, %v175_v27, %v176_v33  ;;  %v179_v45 = vrot.slane %v135_v35, 3  ;;  %v181_v46 = vrot.slane %v136_v41, 3  ;;  %v221_v47 = vsel %vm107_vm1, %v121_v36, %v679_v8 }
  0x44   :  { %v138_v48 = vld [vmem:[%s1000_s4 + $0x60] sm:$0xff]  ;;  %v139_v49 = vld [vmem:[%s1000_s4 + $0x68] sm:$0x7]  ;;  %v140_v50 = vld [vmem:[%s1000_s4 + $0x70] sm:$0xff]  ;;  %243 = vst [vmem:[#allocation9 + $0x38] sm:$0xff] %v177_v44  ;;  %v230_v51 = vsel %vm96_vm0, %v220_v40, %v178_v39  ;;  %v182_v52 = vrot.slane %v137_v42, 3  ;;  %v222_v54 = vsel %vm107_vm1, %v122_v43, %v674_v3 }
  0x45   :  { %v184_v53 = vrot.slane %v138_v48, 3  ;;  %v123_v55 = vld [vmem:[%s999_s3 + $0x7] sm:$0x1]  ;;  %v141_v56 = vld [vmem:[%s1000_s4 + $0x78] sm:$0x7]  ;;  %244 = vst [vmem:[#allocation9 + $0x40] sm:$0xff] %v230_v51  ;;  %v180_v57 = vsel %vm96_vm0, %v178_v39, %v179_v45  ;;  %v231_v58 = vsel %vm96_vm0, %v221_v47, %v181_v46 }
  0x46   :  { %v185_v59 = vrot.slane %v139_v49, 3  ;;  %v187_v60 = vrot.slane %v140_v50, 3  ;;  %v124_v61 = vld [vmem:[%s999_s3 + $0x8] sm:$0x1]  ;;  %v142_v62 = vld [vmem:[%s1000_s4 + $0x80] sm:$0xff]  ;;  %v144_v63 = vld [vmem:[%s1000_s4 + $0x90] sm:$0xff]  ;;  %v183_v0 = vsel %vm96_vm0, %v181_v46, %v182_v52  ;;  %v223_v2 = vsel %vm107_vm1, %v123_v55, %v679_v8 }
  0x47   :  { %245 = vst [vmem:[#allocation9 + $0x48] sm:$0xff] %v180_v57  ;;  %246 = vst [vmem:[#allocation9 + $0x50] sm:$0xff] %v231_v58  ;;  %v232_v1 = vsel %vm96_vm0, %v222_v54, %v184_v53  ;;  %v188_v4 = vrot.slane %v141_v56, 3  ;;  %v143_v5 = vld [vmem:[%s1000_s4 + $0x88] sm:$0x7]  ;;  %v82_v7 = vld [vmem:[%s998_s2] sm:$0xff]  ;;  %v224_v12 = vsel %vm107_vm1, %v124_v61, %v674_v3 }
  0x48   :  { %v125_v6 = vld [vmem:[%s999_s3 + $0x9] sm:$0x1]  ;;  %247 = vst [vmem:[#allocation9 + $0x58] sm:$0xff] %v183_v0  ;;  %248 = vst [vmem:[#allocation9 + $0x60] sm:$0xff] %v232_v1  ;;  %v186_v9 = vsel %vm96_vm0, %v184_v53, %v185_v59  ;;  %v233_v10 = vsel %vm96_vm0, %v223_v2, %v187_v60  ;;  %v190_v11 = vrot.slane %v142_v62, 3  ;;  %v84_v15 = vld [vmem:[%s998_s2 + $0x10] sm:$0xff] }
  0x49   :  { %v145_v13 = vld [vmem:[%s1000_s4 + $0x98] sm:$0x7]  ;;  %v80_v14 = vld [vmem:[#allocation2] sm:$0x1]  ;;  %249 = vst [vmem:[#allocation9 + $0x68] sm:$0xff] %v186_v9  ;;  %250 = vst [vmem:[#allocation9 + $0x70] sm:$0xff] %v233_v10  ;;  %v189_v16 = vsel %vm96_vm0, %v187_v60, %v188_v4  ;;  %v225_v19 = vsel %vm107_vm1, %v125_v6, %v679_v8 }
  0x4a   :  { %v191_v17 = vrot.slane %v143_v5, 3  ;;  %v193_v18 = vrot.slane %v144_v63, 3  ;;  %v83_v20 = vld [vmem:[%s998_s2 + $0x8] sm:$0x7]  ;;  %v81_v21 = vld [vmem:[#allocation2 + $0x1] sm:$0x1]  ;;  %v234_v22 = vsel %vm96_vm0, %v224_v12, %v190_v11  ;;  %v108_v25 = vsel %vm107_vm1, %v80_v14, %v674_v3 }
  0x4b   :  { %251 = vst [vmem:[#allocation9 + $0x78] sm:$0xff] %v189_v16  ;;  %v194_v23 = vrot.slane %v145_v13, 3  ;;  %v97_v24 = vrot.slane %v82_v7, 3  ;;  %v85_v26 = vld [vmem:[%s998_s2 + $0x18] sm:$0x7]  ;;  %252 = vst [vmem:[#allocation9 + $0x80] sm:$0xff] %v234_v22  ;;  %v109_v37 = vsel %vm107_vm1, %v81_v21, %v679_v8 }
  0x4c   :  { %v813_v27 = vld [vmem:[#allocation7] sm:$0x3]  ;;  %v192_v28 = vsel %vm96_vm0, %v190_v11, %v191_v17  ;;  %v235_v29 = vsel %vm96_vm0, %v225_v19, %v193_v18  ;;  %v98_v30 = vrot.slane %v83_v20, 3  ;;  %v100_v31 = vrot.slane %v84_v15, 3  ;;  %v256_v32 = vld [vmem:[%s1001_s5] sm:$0x1] }
  0x4d   :  { %v262_v33 = vld [vmem:[%s1003_s7] sm:$0xff]  ;;  %v264_v34 = vld [vmem:[%s1003_s7 + $0x10] sm:$0xff]  ;;  %253 = vst [vmem:[#allocation9 + $0x88] sm:$0xff] %v192_v28  ;;  %254 = vst [vmem:[#allocation9 + $0x90] sm:$0xff] %v235_v29  ;;  %v195_v35 = vsel %vm96_vm0, %v193_v18, %v194_v23  ;;  %v110_v36 = vsel %vm96_vm0, %v108_v25, %v97_v24  ;;  %v101_v38 = vrot.slane %v85_v26, 3  ;;  %v277_v44 = vrot.slane %v813_v27, 3 }
  0x4e   :  { %v263_v39 = vld [vmem:[%s1003_s7 + $0x8] sm:$0x1]  ;;  %v833_v40 = vld [vmem:[#allocation7 + $0x2] sm:$0x3]  ;;  %v838_v41 = vld [vmem:[%s1003_s7 + $0x20] sm:$0xff]  ;;  %255 = vst [vmem:[#allocation9 + $0x98] sm:$0xff] %v195_v35  ;;  %v99_v42 = vsel %vm96_vm0, %v97_v24, %v98_v30  ;;  %v111_v43 = vsel %vm96_vm0, %v109_v37, %v100_v31  ;;  %v326_v49 = vsel %vm107_vm1, %v256_v32, %v674_v3 }
  0x4f   :  { %112 = vst [vmem:[#allocation8] sm:$0xff] %v110_v36  ;;  %v296_v45 = vrot.slane %v262_v33, 1  ;;  %v257_v46 = vld [vmem:[%s1001_s5 + $0x1] sm:$0x1]  ;;  %v265_v47 = vld [vmem:[%s1003_s7 + $0x18] sm:$0x1]  ;;  %v102_v48 = vsel %vm96_vm0, %v100_v31, %v101_v38  ;;  %v332_v54 = vsel %vm96_vm0, %v326_v49, %v277_v44 }
  0x50   :  { %113 = vst [vmem:[#allocation8 + $0x8] sm:$0xff] %v99_v42  ;;  %114 = vst [vmem:[#allocation8 + $0x10] sm:$0xff] %v111_v43  ;;  %v297_v50 = vrot.slane %v263_v39, 1  ;;  %v278_v51 = vrot.slane %v833_v40, 3  ;;  %v853_v52 = vld [vmem:[#allocation7 + $0x4] sm:$0x3]  ;;  %v327_v56 = vsel %vm107_vm1, %v257_v46, %v679_v8 }
  0x51   :  { %v258_v53 = vld [vmem:[%s1001_s5 + $0x2] sm:$0x1]  ;;  %115 = vst [vmem:[#allocation8 + $0x18] sm:$0xff] %v102_v48  ;;  %v299_v55 = vrot.slane %v264_v34, 1  ;;  %v300_v57 = vrot.slane %v265_v47, 1  ;;  %v338_v60 = vsel %vm295_vm2, %v332_v54, %v296_v45  ;;  %v279_v63 = vrot.slane %v853_v52, 3 }
  0x52   :  { %v267_v58 = vld [vmem:[%s1003_s7 + $0x28] sm:$0x1]  ;;  %v259_v59 = vld [vmem:[%s1001_s5 + $0x3] sm:$0x1]  ;;  %v298_v61 = vsel %vm295_vm2, %v296_v45, %v297_v50  ;;  %v333_v62 = vsel %vm96_vm0, %v327_v56, %v278_v51  ;;  %v876_v0 = vld [vmem:[%s1003_s7 + $0x30] sm:$0xff]  ;;  %344 = vst [vmem:[#allocation11] sm:$0xff] %v338_v60  ;;  %v328_v7 = vsel %vm107_vm1, %v258_v53, %v674_v3 }
  0x53   :  { %v881_v1 = vld [vmem:[%s1003_s7 + $0x38] sm:$0x1]  ;;  %v260_v2 = vld [vmem:[%s1001_s5 + $0x4] sm:$0x1]  ;;  %345 = vst [vmem:[#allocation11 + $0x8] sm:$0xff] %v298_v61  ;;  %v339_v4 = vsel %vm295_vm2, %v333_v62, %v299_v55  ;;  %v301_v5 = vsel %vm295_vm2, %v299_v55, %v300_v57  ;;  %v302_v6 = vrot.slane %v838_v41, 1  ;;  %v334_v12 = vsel %vm96_vm0, %v328_v7, %v279_v63 }
  0x54   :  { %v270_v9 = vld [vmem:[%s1003_s7 + $0x40] sm:$0xff]  ;;  %v271_v10 = vld [vmem:[%s1003_s7 + $0x48] sm:$0x1]  ;;  %346 = vst [vmem:[#allocation11 + $0x10] sm:$0xff] %v339_v4  ;;  %347 = vst [vmem:[#allocation11 + $0x18] sm:$0xff] %v301_v5  ;;  %v303_v13 = vrot.slane %v267_v58, 1  ;;  %v329_v15 = vsel %vm107_vm1, %v259_v59, %v679_v8 }
  0x55   :  { %v261_v11 = vld [vmem:[%s1001_s5 + $0x5] sm:$0x1]  ;;  %v305_v14 = vrot.slane %v876_v0, 1  ;;  %v272_v16 = vld [vmem:[%s1003_s7 + $0x50] sm:$0xff]  ;;  %v273_v17 = vld [vmem:[%s1003_s7 + $0x58] sm:$0x1]  ;;  %v340_v18 = vsel %vm295_vm2, %v334_v12, %v302_v6  ;;  %v335_v19 = vsel %vm96_vm0, %v329_v15, %v277_v44 }
  0x56   :  { %s918_s30 = sshll.u32 %s570_s29, 4  ;;  %v306_v20 = vrot.slane %v881_v1, 1  ;;  %v308_v21 = vrot.slane %v270_v9, 1  ;;  %s485_s0 = scalar_lea.vmem %s887_s15, 2560  ;;  %s386_s30 = int_to_ptr.vmem [resolvable:$true] %s918_s30 }
  0x57   :  { %p486_p10 = scmp.ne.s32.totalorder %s887_s15, %s485_s0  ;;  %p491_p12 = scmp.lt.s32.totalorder %s485_s0, %s485_s0 }
  0x59   :  { %p492_p13 = por %p491_p12, %p490_p11 }
  0x5b   :  { %p493_p0 = pnand %p492_p13, %p486_p10 }
  0x5d   :  { %496 = shalt.err (!%p493_p0)
}
  0x5e   :  { %s497_s11 = scalar_lea.hbm %s1005_s9, 2560 }
  0x5f   :  { %p498_p1 = scmp.ne.s32.totalorder %s1005_s9, %s497_s11  ;;  %p501_p2 = scmp.lt.u32.totalorder %s497_s11, %s1005_s9 }
  0x61   :  { %p503_p3 = pnand %p501_p2, %p498_p1 }
  0x63   :  { %506 = shalt.err (!%p503_p3)
}
  0x64   :  { %s571_s1 = smov 128   ;;  %s572_s14 = smov 8   ;;  %348 = vst [vmem:[#allocation11 + $0x20] sm:$0xff] %v340_v18  ;;  %v304_v22 = vsel %vm295_vm2, %v302_v6, %v303_v13  ;;  %v341_v23 = vsel %vm295_vm2, %v335_v19, %v305_v14  ;;  %v330_v24 = vsel %vm107_vm1, %v260_v2, %v674_v3  ;;  %v309_v25 = vrot.slane %v271_v10, 1 }
  0x65   :  { %379 = dma.vmem_to_hbm [thread:$0]  %s887_s15, 2560, %s1005_s9, [#allocation10], %s571_s1, %s571_s1, %s572_s14  }
  0x66   :  { %s507_s19 = scalar_lea.vmem %s904_s17, 512  ;;  %p512_p5 = scmp.lt.s32.totalorder %s904_s17, %s904_s17 }
  0x67   :  { %p508_p4 = scmp.ne.s32.totalorder %s904_s17, %s507_s19  ;;  %p513_p6 = scmp.lt.s32.totalorder %s507_s19, %s507_s19 }
  0x69   :  { %p514_p7 = por %p513_p6, %p512_p5 }
  0x6b   :  { %p515_p8 = pnand %p514_p7, %p508_p4 }
  0x6d   :  { %518 = shalt.err (!%p515_p8)
}
  0x6e   :  { %s519_s9 = scalar_lea.hbm %s1004_s8, 512 }
  0x6f   :  { %p520_p9 = scmp.ne.s32.totalorder %s1004_s8, %s519_s9  ;;  %p523_p10 = scmp.lt.u32.totalorder %s519_s9, %s1004_s8 }
  0x71   :  { %p525_p11 = pnand %p523_p10, %p520_p9 }
  0x73   :  { %528 = shalt.err (!%p525_p11)
}
  0x74   :  { %367 = dma.vmem_to_hbm [thread:$0]  %s904_s17, 512, %s1004_s8, [#allocation4], %s571_s1, %s571_s1, %s572_s14   ;;  %349 = vst [vmem:[#allocation11 + $0x28] sm:$0xff] %v304_v22  ;;  %350 = vst [vmem:[#allocation11 + $0x30] sm:$0xff] %v341_v23  ;;  %v307_v3 = vsel %vm295_vm2, %v305_v14, %v306_v20  ;;  %v336_v26 = vsel %vm96_vm0, %v330_v24, %v278_v51  ;;  %v311_v27 = vrot.slane %v272_v16, 1  ;;  %v331_v28 = vsel %vm107_vm1, %v261_v11, %v679_v8 }
  0x75   :  { %351 = vst [vmem:[#allocation11 + $0x38] sm:$0xff] %v307_v3  ;;  %v342_v29 = vsel %vm295_vm2, %v336_v26, %v308_v21  ;;  %v310_v30 = vsel %vm295_vm2, %v308_v21, %v309_v25  ;;  %v337_v31 = vsel %vm96_vm0, %v331_v28, %v279_v63  ;;  %v312_v32 = vrot.slane %v273_v17, 1  ;;  %s529_s8 = scalar_lea.vmem %s386_s30, 1536  ;;  %p534_p13 = scmp.lt.s32.totalorder %s386_s30, %s386_s30 }
  0x76   :  { %352 = vst [vmem:[#allocation11 + $0x40] sm:$0xff] %v342_v29  ;;  %353 = vst [vmem:[#allocation11 + $0x48] sm:$0xff] %v310_v30  ;;  %v343_v33 = vsel %vm295_vm2, %v337_v31, %v311_v27  ;;  %p530_p12 = scmp.ne.s32.totalorder %s386_s30, %s529_s8  ;;  %p535_p0 = scmp.lt.s32.totalorder %s529_s8, %s529_s8 }
  0x77   :  { %354 = vst [vmem:[#allocation11 + $0x50] sm:$0xff] %v343_v33  ;;  %v313_v34 = vsel %vm295_vm2, %v311_v27, %v312_v32 }
  0x78   :  { %355 = vst [vmem:[#allocation11 + $0x58] sm:$0xff] %v313_v34  ;;  %p536_p1 = por %p535_p0, %p534_p13 }
  0x7a   :  { %p537_p2 = pnand %p536_p1, %p530_p12 }
  0x7c   :  { %540 = shalt.err (!%p537_p2)
}
  0x7d   :  { %s541_s26 = scalar_lea.hbm %s1006_s10, 1536 }
  0x7e   :  { %p542_p3 = scmp.ne.s32.totalorder %s1006_s10, %s541_s26  ;;  %p545_p4 = scmp.lt.u32.totalorder %s541_s26, %s1006_s10 }
  0x80   :  { %p547_p5 = pnand %p545_p4, %p542_p3 }
  0x82   :  { %550 = shalt.err (!%p547_p5)
}
  0x83   :  { %391 = dma.vmem_to_hbm [thread:$0]  %s386_s30, 1536, %s1006_s10, [#allocation10], %s571_s1, %s571_s1, %s572_s14  }
  0x84   :  { %555 = dma.done.wait [#allocation4], 512  }
  0x85   :  { %556 = vsyncadd [#allocation4], 4294966784 }
  0x86   :  { %557 = dma.done.wait [#allocation10], 4096  }
  0x87   :  { %558 = vsyncadd [#allocation10], 4294963200 }
  0x88   :  { %401 = vsyncpa [#allocation3], 1 }
  0x89   :  { %402 = vsyncpa [#allocation6], 1 }
  0x8a   :  { %403 = vsyncpa [#allocation4], 1 }
  0x8b   :  { %404 = vsyncpa [#allocation10], 1 }

</bundles_post_ra>
